<compile_context>
chip_gen: v5e
topology: v5e:2x2
jax: 0.10.0
libtpu: 0.0.40
codegen_flags: <defaults>
</compile_context>

<pallas_src>
import jax
import jax.numpy as jnp
from jax.experimental import pallas as pl
from jax.experimental.pallas import tpu as pltpu

_BN_EPS = 1e-3


# ---------------------------- Pallas kernel ----------------------------
def _make_head_kernel(H, W, B, compute_dtype):
    HW = H * W
    L = B * HW  # lanes per grid step (B images packed side by side)
    # Shift -> mask-row mapping (distinct keys require W > 2, true for any
    # image where a dilation-2 1x3 conv makes sense).
    mask_row = {-W: 0, W: 1, -1: 2, 1: 3, -2 * W: 4, 2 * W: 5, -2: 6, 2: 7}

    def kernel(x_ref, m_ref, wall_ref, vecs_ref, wo_ref, bo_ref, o_ref):
        f32 = jnp.float32

        def shifted(xv, s):
            # y[:, i] = xv[:, i + s], zeroed where i+s leaves the image; the
            # per-image masks also zero the lanes where pltpu.roll wraps data
            # across the B lane-batched images.
            xr = pltpu.roll(xv, (-s) % L, axis=1)        # XLU lane rotate
            r = mask_row[s]
            return xr * m_ref[r:r + 1, :]                # (1, L) bcast, f32

        def dot(w, a):
            # Cast activations right at the MXU operand; elementwise stays f32.
            return jnp.dot(w, a.astype(compute_dtype),
                           preferred_element_type=f32)

        def sep_conv(xv, base, off):
            # 3-tap separable conv = three accumulated (C,C)@(C,L) MXU dots
            # (no (3C, L) concat temporary).
            return (dot(wall_ref[base + 0], shifted(xv, -off))
                    + dot(wall_ref[base + 1], xv)
                    + dot(wall_ref[base + 2], shifted(xv, off)))

        x = x_ref[...].astype(f32)     # (C, L): channels on sublanes, pixels on lanes
        b1 = vecs_ref[:, 0:1]; s1 = vecs_ref[:, 1:2]; t1 = vecs_ref[:, 2:3]
        b3 = vecs_ref[:, 3:4]; s2 = vecs_ref[:, 4:5]; t2 = vecs_ref[:, 5:6]

        # ---- non_bottleneck_1d(input_dim, dropprob=0.5, dilated=2), eval mode ----
        o = jnp.maximum(sep_conv(x, 0, W) + b1, 0.0)            # conv3x1_1 + relu
        o = sep_conv(o, 3, 1)                                   # conv1x3_1 (bias folded into t1)
        o = jnp.maximum(o * s1 + t1, 0.0)                       # bn1 (eval) + relu
        o = jnp.maximum(sep_conv(o, 6, 2 * W) + b3, 0.0)        # conv3x1_2 (dil 2, H) + relu
        o = sep_conv(o, 9, 2)                                   # conv1x3_2 (dil 2, W; bias into t2)
        o = o * s2 + t2                                         # bn2 (eval)
        # TODO(synk): Dropout2d(p=0.5) is stochastic in train mode; eval-mode identity is used.
        o = jnp.maximum(o + x, 0.0)                             # residual + relu

        # ---- Head's final 1x1 conv (bias=True) ----
        y = dot(wo_ref[...], o) + bo_ref[...]
        o_ref[...] = y.astype(o_ref.dtype)

    return kernel


def _build_shift_masks(H, W, B):
    """(8, B*H*W) f32 validity masks for the 8 shifts, tiled per image."""
    HW = H * W
    i = jnp.arange(B * HW, dtype=jnp.int32) % HW     # pixel index within its image
    col = i % W
    rows = [
        i >= W,            # 0: H-shift, offset -W   (dil 1)
        i < HW - W,        # 1: H-shift, offset +W   (dil 1)
        col >= 1,          # 2: W-shift, offset -1   (dil 1)
        col < W - 1,       # 3: W-shift, offset +1   (dil 1)
        i >= 2 * W,        # 4: H-shift, offset -2W  (dil 2)
        i < HW - 2 * W,    # 5: H-shift, offset +2W  (dil 2)
        col >= 2,          # 6: W-shift, offset -2   (dil 2)
        col < W - 2,       # 7: W-shift, offset +2   (dil 2)
    ]
    return jnp.stack(rows, axis=0).astype(jnp.float32)


def _choose_images_per_step(n):
    """Pack images into the lane axis, but keep >=2 grid steps when possible so
    both v7x TensorCores are fed; v5e/v6e (1 TC) only pay one extra ~0.35us step."""
    if n <= 1:
        return 1
    for b in range(n // 2, 0, -1):   # largest divisor of n that is <= n//2
        if n % b == 0:
            return b
    return 1


def head_forward_pallas(x_nchw, kp, *, matmul_dtype=jnp.float32):
    """x_nchw: (N, C, H, W) float32 -> (N, O, H, W) float32.

    matmul_dtype=jnp.bfloat16 halves activation/weight DMA bytes and uses the
    bf16 MXU (recommended for v6e/v7x at production sizes); elementwise math
    stays f32 either way.
    """
    N, C, H, W = x_nchw.shape
    O = kp["wo"].shape[0]
    HW = H * W
    B = _choose_images_per_step(N)
    steps = N // B
    L = B * HW

    # Lane-batched, lane-dense layout: (C, N*HW); image n occupies lanes
    # [n*HW, (n+1)*HW).  Wrapper transpose is layout plumbing only.
    x2d = (x_nchw.reshape(N, C, HW).transpose(1, 0, 2)
           .reshape(C, N * HW).astype(matmul_dtype))
    masks = _build_shift_masks(H, W, B)
    wall = kp["wall"].astype(matmul_dtype)
    wo = kp["wo"].astype(matmul_dtype)
    vecs, bo = kp["vecs"], kp["bo"]

    def full_spec(a):
        return pl.BlockSpec(a.shape, lambda s, nd=a.ndim: (0,) * nd)

    # Rough VMEM budget: double-buffered in/out blocks + packed params +
    # live f32 intermediates.  Raise the scoped limit as blocks grow, but
    # clamp to v7x's 64 MiB physical VMEM.
    elt = jnp.dtype(matmul_dtype).itemsize
    est = (2 * 2 * (C * L * elt + O * L * 4)
           + masks.size * 4 + wall.size * elt + vecs.size * 4
           + wo.size * elt + bo.size * 4
           + 10 * C * L * 4)
    vmem_limit = int(min(max(est + (4 << 20), 32 << 20), 64 << 20))

    kernel = _make_head_kernel(H, W, B, matmul_dtype)
    out2d = pl.pallas_call(
        kernel,
        out_shape=jax.ShapeDtypeStruct((O, N * HW), jnp.float32),
        grid=(steps,),
        in_specs=[pl.BlockSpec((C, L), lambda s: (0, s)),
                  full_spec(masks), full_spec(wall), full_spec(vecs),
                  full_spec(wo), full_spec(bo)],
        out_specs=pl.BlockSpec((O, L), lambda s: (0, s)),
        compiler_params=pltpu.CompilerParams(
            dimension_semantics=("parallel",),
            vmem_limit_bytes=vmem_limit),
    )(x2d, masks, wall, vecs, wo, bo)

    return (out2d.reshape(O, N, HW).transpose(1, 0, 2)
            .reshape(N, O, H, W))


# ------------- deterministic parameter init (PyTorch layouts) -------------
def init_params(key, c, o):
    keys = jax.random.split(key, 18)

    def w(k, shape, scale=0.1):
        return scale * jax.random.normal(k, shape, jnp.float32)

    p = {}
    p["conv3x1_1_w"] = w(keys[0], (c, c, 3, 1)); p["conv3x1_1_b"] = w(keys[1], (c,))
    p["conv1x3_1_w"] = w(keys[2], (c, c, 1, 3)); p["conv1x3_1_b"] = w(keys[3], (c,))
    p["conv3x1_2_w"] = w(keys[4], (c, c, 3, 1)); p["conv3x1_2_b"] = w(keys[5], (c,))
    p["conv1x3_2_w"] = w(keys[6], (c, c, 1, 3)); p["conv1x3_2_b"] = w(keys[7], (c,))
    p["bn1_gamma"] = 1.0 + w(keys[8], (c,));  p["bn1_beta"] = w(keys[9], (c,))
    p["bn1_mean"]  = w(keys[10], (c,));       p["bn1_var"]  = 0.5 + jnp.abs(w(keys[11], (c,)))
    p["bn2_gamma"] = 1.0 + w(keys[12], (c,)); p["bn2_beta"] = w(keys[13], (c,))
    p["bn2_mean"]  = w(keys[14], (c,));       p["bn2_var"]  = 0.5 + jnp.abs(w(keys[15], (c,)))
    p["conv1x1_w"] = w(keys[16], (o, c, 1, 1)); p["conv1x1_b"] = w(keys[17], (o,))
    return p


def to_kernel_params(p):
    def taps_h(wt):  # (O, I, 3, 1) -> 3 x (O, I), tap k multiplies x[h + (k-1)*dil]
        return [wt[:, :, k, 0] for k in range(3)]

    def taps_w(wt):  # (O, I, 1, 3) -> 3 x (O, I)
        return [wt[:, :, 0, k] for k in range(3)]

    def bn_affine(g, b, m, v):
        scale = g / jnp.sqrt(v + _BN_EPS)
        return scale, b - m * scale

    s1, t1 = bn_affine(p["bn1_gamma"], p["bn1_beta"], p["bn1_mean"], p["bn1_var"])
    s2, t2 = bn_affine(p["bn2_gamma"], p["bn2_beta"], p["bn2_mean"], p["bn2_var"])
    # Fold the 1x3-conv biases into the following BN affine: bn(conv + b) = s*conv + (s*b + t).
    t1 = s1 * p["conv1x3_1_b"] + t1
    t2 = s2 * p["conv1x3_2_b"] + t2

    # One (12, C, C) weight slab: 4 separable convs x 3 taps each.
    wall = jnp.stack(
        taps_h(p["conv3x1_1_w"]) + taps_w(p["conv1x3_1_w"])
        + taps_h(p["conv3x1_2_w"]) + taps_w(p["conv1x3_2_w"]),
        axis=0).astype(jnp.float32)

    c = p["conv3x1_1_w"].shape[0]
    zeros = jnp.zeros((c,), jnp.float32)
    # One (C, 8) per-channel-vector slab: [b1, s1, t1, b3, s2, t2, 0, 0].
    vecs = jnp.stack(
        [p["conv3x1_1_b"], s1, t1, p["conv3x1_2_b"], s2, t2, zeros, zeros],
        axis=1).astype(jnp.float32)

    return dict(
        wall=wall, vecs=vecs,
        wo=p["conv1x1_w"][:, :, 0, 0].astype(jnp.float32),   # (O, C)
        bo=p["conv1x1_b"][:, None].astype(jnp.float32),       # (O, 1)
    )


# ---------- pure-JAX reference (NCHW, matches PyTorch eval semantics) ----------
def head_forward_ref(x, p):
    def conv(x, wt, b, pad, dil):
        y = jax.lax.conv_general_dilated(
            x, wt, window_strides=(1, 1), padding=pad, rhs_dilation=dil,
            dimension_numbers=("NCHW", "OIHW", "NCHW"),
            precision=jax.lax.Precision.HIGHEST)
        return y + b[None, :, None, None]

    def bn(x, g, b, m, v):
        return ((x - m[None, :, None, None])
                / jnp.sqrt(v + _BN_EPS)[None, :, None, None]
                * g[None, :, None, None] + b[None, :, None, None])

    o = jax.nn.relu(conv(x, p["conv3x1_1_w"], p["conv3x1_1_b"], ((1, 1), (0, 0)), (1, 1)))
    o = conv(o, p["conv1x3_1_w"], p["conv1x3_1_b"], ((0, 0), (1, 1)), (1, 1))
    o = jax.nn.relu(bn(o, p["bn1_gamma"], p["bn1_beta"], p["bn1_mean"], p["bn1_var"]))
    o = jax.nn.relu(conv(o, p["conv3x1_2_w"], p["conv3x1_2_b"], ((2, 2), (0, 0)), (2, 1)))
    o = conv(o, p["conv1x3_2_w"], p["conv1x3_2_b"], ((0, 0), (2, 2)), (1, 2))
    o = bn(o, p["bn2_gamma"], p["bn2_beta"], p["bn2_mean"], p["bn2_var"])
    o = jax.nn.relu(o + x)
    return conv(o, p["conv1x1_w"], p["conv1x1_b"], ((0, 0), (0, 0)), (1, 1))


if __name__ == "__main__":
    key = jax.random.PRNGKey(0)
    # input_dim=8, output_dim=4; N=4 exercises lane-batching (2 images/step x 2 steps).
    N, C, H, W, O = 4, 8, 16, 16, 4

    kx, kparam = jax.random.split(key)
    x = jax.random.normal(kx, (N, C, H, W), jnp.float32)
    p = init_params(kparam, C, O)
    kp = to_kernel_params(p)

    ref = head_forward_ref(x, p)

    # f32 path: exact-math check against the NCHW reference.
    out = jax.block_until_ready(head_forward_pallas(x, kp))
    assert out.shape == (N, O, H, W), out.shape
    if not jnp.allclose(out, ref, atol=1e-3, rtol=1e-3):
        raise AssertionError("Pallas f32 output does not match JAX reference")

    # bf16 MXU-operand path (v6e/v7x production recommendation): only validates
    # the plumbing, so tolerance is loosened for bf16 quantization.
    out_bf16 = jax.block_until_ready(
        head_forward_pallas(x, kp, matmul_dtype=jnp.bfloat16))
    if not jnp.allclose(out_bf16, ref, atol=5e-2, rtol=5e-2):
        raise AssertionError("Pallas bf16 output deviates too much from reference")

    print("KERNEL_OK")
</pallas_src>

<mosaic_0001>
module attributes {stable_mosaic.version = 11 : i64} {
  func.func @kernel(%arg0: i32, %arg1: memref<8x512xf32, #tpu.memory_space<vmem>>, %arg2: memref<8x512xf32, #tpu.memory_space<vmem>>, %arg3: memref<12x8x8xf32, #tpu.memory_space<vmem>>, %arg4: memref<8x8xf32, #tpu.memory_space<vmem>>, %arg5: memref<4x8xf32, #tpu.memory_space<vmem>>, %arg6: memref<4x1xf32, #tpu.memory_space<vmem>>, %arg7: memref<4x512xf32, #tpu.memory_space<vmem>>) attributes {dimension_semantics = [#tpu.dimension_semantics<parallel>], iteration_bounds = array<i64: 2>, scalar_prefetch = 0 : i64, scratch_operands = 0 : i64, tpu.core_type = #tpu.core_type<tc>, window_params = [{transform_indices = @transform_0, window_bounds = array<i64: 8, 512>}, {pipeline_mode = #tpu.pipeline_mode<synchronous>, transform_indices = @transform_1, window_bounds = array<i64: 8, 512>}, {pipeline_mode = #tpu.pipeline_mode<synchronous>, transform_indices = @transform_2, window_bounds = array<i64: 12, 8, 8>}, {pipeline_mode = #tpu.pipeline_mode<synchronous>, transform_indices = @transform_3, window_bounds = array<i64: 8, 8>}, {pipeline_mode = #tpu.pipeline_mode<synchronous>, transform_indices = @transform_4, window_bounds = array<i64: 4, 8>}, {pipeline_mode = #tpu.pipeline_mode<synchronous>, transform_indices = @transform_5, window_bounds = array<i64: 4, 1>}, {transform_indices = @transform_6, window_bounds = array<i64: 4, 512>}]} {
    %c0 = arith.constant 0 : index
    %c0_0 = arith.constant 0 : index
    %0 = vector.load %arg1[%c0, %c0_0] : memref<8x512xf32, #tpu.memory_space<vmem>>, vector<8x512xf32>
    %c0_1 = arith.constant 0 : index
    %c0_2 = arith.constant 0 : index
    %1 = vector.load %arg4[%c0_1, %c0_2] : memref<8x8xf32, #tpu.memory_space<vmem>>, vector<8x1xf32>
    %c0_3 = arith.constant 0 : index
    %c1 = arith.constant 1 : index
    %2 = vector.load %arg4[%c0_3, %c1] : memref<8x8xf32, #tpu.memory_space<vmem>>, vector<8x1xf32>
    %c0_4 = arith.constant 0 : index
    %c2 = arith.constant 2 : index
    %3 = vector.load %arg4[%c0_4, %c2] : memref<8x8xf32, #tpu.memory_space<vmem>>, vector<8x1xf32>
    %c0_5 = arith.constant 0 : index
    %c3 = arith.constant 3 : index
    %4 = vector.load %arg4[%c0_5, %c3] : memref<8x8xf32, #tpu.memory_space<vmem>>, vector<8x1xf32>
    %c0_6 = arith.constant 0 : index
    %c4 = arith.constant 4 : index
    %5 = vector.load %arg4[%c0_6, %c4] : memref<8x8xf32, #tpu.memory_space<vmem>>, vector<8x1xf32>
    %c0_7 = arith.constant 0 : index
    %c5 = arith.constant 5 : index
    %6 = vector.load %arg4[%c0_7, %c5] : memref<8x8xf32, #tpu.memory_space<vmem>>, vector<8x1xf32>
    %c0_8 = arith.constant 0 : index
    %c0_9 = arith.constant 0 : index
    %c0_10 = arith.constant 0 : index
    %7 = vector.load %arg3[%c0_8, %c0_9, %c0_10] : memref<12x8x8xf32, #tpu.memory_space<vmem>>, vector<1x8x8xf32>
    %8 = vector.shape_cast %7 : vector<1x8x8xf32> to vector<8x8xf32>
    %c16_i32 = arith.constant 16 : i32
    %9 = tpu.dynamic_rotate %0 by %c16_i32 dim 1 : vector<8x512xf32>, i32 -> vector<8x512xf32>
    %c0_11 = arith.constant 0 : index
    %c0_12 = arith.constant 0 : index
    %10 = vector.load %arg2[%c0_11, %c0_12] : memref<8x512xf32, #tpu.memory_space<vmem>>, vector<1x512xf32>
    %11 = vector.broadcast %10 : vector<1x512xf32> to vector<8x512xf32>
    %12 = arith.mulf %9, %11 : vector<8x512xf32>
    %cst = arith.constant dense<0.000000e+00> : vector<8x512xf32>
    %13 = tpu.matmul %8, %12, %cst {dimension_numbers = #tpu.dot_dimension_numbers<[1], [0], [0], [1], [0, 0, 1, 1], [], []>} : vector<8x8xf32>, vector<8x512xf32>, vector<8x512xf32> -> vector<8x512xf32>
    %c1_13 = arith.constant 1 : index
    %c0_14 = arith.constant 0 : index
    %c0_15 = arith.constant 0 : index
    %14 = vector.load %arg3[%c1_13, %c0_14, %c0_15] : memref<12x8x8xf32, #tpu.memory_space<vmem>>, vector<1x8x8xf32>
    %15 = vector.shape_cast %14 : vector<1x8x8xf32> to vector<8x8xf32>
    %cst_16 = arith.constant dense<0.000000e+00> : vector<8x512xf32>
    %16 = tpu.matmul %15, %0, %cst_16 {dimension_numbers = #tpu.dot_dimension_numbers<[1], [0], [0], [1], [0, 0, 1, 1], [], []>} : vector<8x8xf32>, vector<8x512xf32>, vector<8x512xf32> -> vector<8x512xf32>
    %17 = arith.addf %13, %16 : vector<8x512xf32>
    %c2_17 = arith.constant 2 : index
    %c0_18 = arith.constant 0 : index
    %c0_19 = arith.constant 0 : index
    %18 = vector.load %arg3[%c2_17, %c0_18, %c0_19] : memref<12x8x8xf32, #tpu.memory_space<vmem>>, vector<1x8x8xf32>
    %19 = vector.shape_cast %18 : vector<1x8x8xf32> to vector<8x8xf32>
    %c496_i32 = arith.constant 496 : i32
    %20 = tpu.dynamic_rotate %0 by %c496_i32 dim 1 : vector<8x512xf32>, i32 -> vector<8x512xf32>
    %c1_20 = arith.constant 1 : index
    %c0_21 = arith.constant 0 : index
    %21 = vector.load %arg2[%c1_20, %c0_21] : memref<8x512xf32, #tpu.memory_space<vmem>>, vector<1x512xf32>
    %22 = vector.broadcast %21 : vector<1x512xf32> to vector<8x512xf32>
    %23 = arith.mulf %20, %22 : vector<8x512xf32>
    %cst_22 = arith.constant dense<0.000000e+00> : vector<8x512xf32>
    %24 = tpu.matmul %19, %23, %cst_22 {dimension_numbers = #tpu.dot_dimension_numbers<[1], [0], [0], [1], [0, 0, 1, 1], [], []>} : vector<8x8xf32>, vector<8x512xf32>, vector<8x512xf32> -> vector<8x512xf32>
    %25 = arith.addf %17, %24 : vector<8x512xf32>
    %26 = vector.broadcast %1 : vector<8x1xf32> to vector<8x512xf32>
    %27 = arith.addf %25, %26 : vector<8x512xf32>
    %cst_23 = arith.constant 0.000000e+00 : f32
    %28 = vector.broadcast %cst_23 : f32 to vector<8x512xf32>
    %29 = arith.maximumf %27, %28 : vector<8x512xf32>
    %c3_24 = arith.constant 3 : index
    %c0_25 = arith.constant 0 : index
    %c0_26 = arith.constant 0 : index
    %30 = vector.load %arg3[%c3_24, %c0_25, %c0_26] : memref<12x8x8xf32, #tpu.memory_space<vmem>>, vector<1x8x8xf32>
    %31 = vector.shape_cast %30 : vector<1x8x8xf32> to vector<8x8xf32>
    %c1_i32 = arith.constant 1 : i32
    %32 = tpu.dynamic_rotate %29 by %c1_i32 dim 1 : vector<8x512xf32>, i32 -> vector<8x512xf32>
    %c2_27 = arith.constant 2 : index
    %c0_28 = arith.constant 0 : index
    %33 = vector.load %arg2[%c2_27, %c0_28] : memref<8x512xf32, #tpu.memory_space<vmem>>, vector<1x512xf32>
    %34 = vector.broadcast %33 : vector<1x512xf32> to vector<8x512xf32>
    %35 = arith.mulf %32, %34 : vector<8x512xf32>
    %cst_29 = arith.constant dense<0.000000e+00> : vector<8x512xf32>
    %36 = tpu.matmul %31, %35, %cst_29 {dimension_numbers = #tpu.dot_dimension_numbers<[1], [0], [0], [1], [0, 0, 1, 1], [], []>} : vector<8x8xf32>, vector<8x512xf32>, vector<8x512xf32> -> vector<8x512xf32>
    %c4_30 = arith.constant 4 : index
    %c0_31 = arith.constant 0 : index
    %c0_32 = arith.constant 0 : index
    %37 = vector.load %arg3[%c4_30, %c0_31, %c0_32] : memref<12x8x8xf32, #tpu.memory_space<vmem>>, vector<1x8x8xf32>
    %38 = vector.shape_cast %37 : vector<1x8x8xf32> to vector<8x8xf32>
    %cst_33 = arith.constant dense<0.000000e+00> : vector<8x512xf32>
    %39 = tpu.matmul %38, %29, %cst_33 {dimension_numbers = #tpu.dot_dimension_numbers<[1], [0], [0], [1], [0, 0, 1, 1], [], []>} : vector<8x8xf32>, vector<8x512xf32>, vector<8x512xf32> -> vector<8x512xf32>
    %40 = arith.addf %36, %39 : vector<8x512xf32>
    %c5_34 = arith.constant 5 : index
    %c0_35 = arith.constant 0 : index
    %c0_36 = arith.constant 0 : index
    %41 = vector.load %arg3[%c5_34, %c0_35, %c0_36] : memref<12x8x8xf32, #tpu.memory_space<vmem>>, vector<1x8x8xf32>
    %42 = vector.shape_cast %41 : vector<1x8x8xf32> to vector<8x8xf32>
    %c511_i32 = arith.constant 511 : i32
    %43 = tpu.dynamic_rotate %29 by %c511_i32 dim 1 : vector<8x512xf32>, i32 -> vector<8x512xf32>
    %c3_37 = arith.constant 3 : index
    %c0_38 = arith.constant 0 : index
    %44 = vector.load %arg2[%c3_37, %c0_38] : memref<8x512xf32, #tpu.memory_space<vmem>>, vector<1x512xf32>
    %45 = vector.broadcast %44 : vector<1x512xf32> to vector<8x512xf32>
    %46 = arith.mulf %43, %45 : vector<8x512xf32>
    %cst_39 = arith.constant dense<0.000000e+00> : vector<8x512xf32>
    %47 = tpu.matmul %42, %46, %cst_39 {dimension_numbers = #tpu.dot_dimension_numbers<[1], [0], [0], [1], [0, 0, 1, 1], [], []>} : vector<8x8xf32>, vector<8x512xf32>, vector<8x512xf32> -> vector<8x512xf32>
    %48 = arith.addf %40, %47 : vector<8x512xf32>
    %49 = vector.broadcast %2 : vector<8x1xf32> to vector<8x512xf32>
    %50 = arith.mulf %48, %49 : vector<8x512xf32>
    %51 = vector.broadcast %3 : vector<8x1xf32> to vector<8x512xf32>
    %52 = arith.addf %50, %51 : vector<8x512xf32>
    %cst_40 = arith.constant 0.000000e+00 : f32
    %53 = vector.broadcast %cst_40 : f32 to vector<8x512xf32>
    %54 = arith.maximumf %52, %53 : vector<8x512xf32>
    %c6 = arith.constant 6 : index
    %c0_41 = arith.constant 0 : index
    %c0_42 = arith.constant 0 : index
    %55 = vector.load %arg3[%c6, %c0_41, %c0_42] : memref<12x8x8xf32, #tpu.memory_space<vmem>>, vector<1x8x8xf32>
    %56 = vector.shape_cast %55 : vector<1x8x8xf32> to vector<8x8xf32>
    %c32_i32 = arith.constant 32 : i32
    %57 = tpu.dynamic_rotate %54 by %c32_i32 dim 1 : vector<8x512xf32>, i32 -> vector<8x512xf32>
    %c4_43 = arith.constant 4 : index
    %c0_44 = arith.constant 0 : index
    %58 = vector.load %arg2[%c4_43, %c0_44] : memref<8x512xf32, #tpu.memory_space<vmem>>, vector<1x512xf32>
    %59 = vector.broadcast %58 : vector<1x512xf32> to vector<8x512xf32>
    %60 = arith.mulf %57, %59 : vector<8x512xf32>
    %cst_45 = arith.constant dense<0.000000e+00> : vector<8x512xf32>
    %61 = tpu.matmul %56, %60, %cst_45 {dimension_numbers = #tpu.dot_dimension_numbers<[1], [0], [0], [1], [0, 0, 1, 1], [], []>} : vector<8x8xf32>, vector<8x512xf32>, vector<8x512xf32> -> vector<8x512xf32>
    %c7 = arith.constant 7 : index
    %c0_46 = arith.constant 0 : index
    %c0_47 = arith.constant 0 : index
    %62 = vector.load %arg3[%c7, %c0_46, %c0_47] : memref<12x8x8xf32, #tpu.memory_space<vmem>>, vector<1x8x8xf32>
    %63 = vector.shape_cast %62 : vector<1x8x8xf32> to vector<8x8xf32>
    %cst_48 = arith.constant dense<0.000000e+00> : vector<8x512xf32>
    %64 = tpu.matmul %63, %54, %cst_48 {dimension_numbers = #tpu.dot_dimension_numbers<[1], [0], [0], [1], [0, 0, 1, 1], [], []>} : vector<8x8xf32>, vector<8x512xf32>, vector<8x512xf32> -> vector<8x512xf32>
    %65 = arith.addf %61, %64 : vector<8x512xf32>
    %c8 = arith.constant 8 : index
    %c0_49 = arith.constant 0 : index
    %c0_50 = arith.constant 0 : index
    %66 = vector.load %arg3[%c8, %c0_49, %c0_50] : memref<12x8x8xf32, #tpu.memory_space<vmem>>, vector<1x8x8xf32>
    %67 = vector.shape_cast %66 : vector<1x8x8xf32> to vector<8x8xf32>
    %c480_i32 = arith.constant 480 : i32
    %68 = tpu.dynamic_rotate %54 by %c480_i32 dim 1 : vector<8x512xf32>, i32 -> vector<8x512xf32>
    %c5_51 = arith.constant 5 : index
    %c0_52 = arith.constant 0 : index
    %69 = vector.load %arg2[%c5_51, %c0_52] : memref<8x512xf32, #tpu.memory_space<vmem>>, vector<1x512xf32>
    %70 = vector.broadcast %69 : vector<1x512xf32> to vector<8x512xf32>
    %71 = arith.mulf %68, %70 : vector<8x512xf32>
    %cst_53 = arith.constant dense<0.000000e+00> : vector<8x512xf32>
    %72 = tpu.matmul %67, %71, %cst_53 {dimension_numbers = #tpu.dot_dimension_numbers<[1], [0], [0], [1], [0, 0, 1, 1], [], []>} : vector<8x8xf32>, vector<8x512xf32>, vector<8x512xf32> -> vector<8x512xf32>
    %73 = arith.addf %65, %72 : vector<8x512xf32>
    %74 = vector.broadcast %4 : vector<8x1xf32> to vector<8x512xf32>
    %75 = arith.addf %73, %74 : vector<8x512xf32>
    %cst_54 = arith.constant 0.000000e+00 : f32
    %76 = vector.broadcast %cst_54 : f32 to vector<8x512xf32>
    %77 = arith.maximumf %75, %76 : vector<8x512xf32>
    %c9 = arith.constant 9 : index
    %c0_55 = arith.constant 0 : index
    %c0_56 = arith.constant 0 : index
    %78 = vector.load %arg3[%c9, %c0_55, %c0_56] : memref<12x8x8xf32, #tpu.memory_space<vmem>>, vector<1x8x8xf32>
    %79 = vector.shape_cast %78 : vector<1x8x8xf32> to vector<8x8xf32>
    %c2_i32 = arith.constant 2 : i32
    %80 = tpu.dynamic_rotate %77 by %c2_i32 dim 1 : vector<8x512xf32>, i32 -> vector<8x512xf32>
    %c6_57 = arith.constant 6 : index
    %c0_58 = arith.constant 0 : index
    %81 = vector.load %arg2[%c6_57, %c0_58] : memref<8x512xf32, #tpu.memory_space<vmem>>, vector<1x512xf32>
    %82 = vector.broadcast %81 : vector<1x512xf32> to vector<8x512xf32>
    %83 = arith.mulf %80, %82 : vector<8x512xf32>
    %cst_59 = arith.constant dense<0.000000e+00> : vector<8x512xf32>
    %84 = tpu.matmul %79, %83, %cst_59 {dimension_numbers = #tpu.dot_dimension_numbers<[1], [0], [0], [1], [0, 0, 1, 1], [], []>} : vector<8x8xf32>, vector<8x512xf32>, vector<8x512xf32> -> vector<8x512xf32>
    %c10 = arith.constant 10 : index
    %c0_60 = arith.constant 0 : index
    %c0_61 = arith.constant 0 : index
    %85 = vector.load %arg3[%c10, %c0_60, %c0_61] : memref<12x8x8xf32, #tpu.memory_space<vmem>>, vector<1x8x8xf32>
    %86 = vector.shape_cast %85 : vector<1x8x8xf32> to vector<8x8xf32>
    %cst_62 = arith.constant dense<0.000000e+00> : vector<8x512xf32>
    %87 = tpu.matmul %86, %77, %cst_62 {dimension_numbers = #tpu.dot_dimension_numbers<[1], [0], [0], [1], [0, 0, 1, 1], [], []>} : vector<8x8xf32>, vector<8x512xf32>, vector<8x512xf32> -> vector<8x512xf32>
    %88 = arith.addf %84, %87 : vector<8x512xf32>
    %c11 = arith.constant 11 : index
    %c0_63 = arith.constant 0 : index
    %c0_64 = arith.constant 0 : index
    %89 = vector.load %arg3[%c11, %c0_63, %c0_64] : memref<12x8x8xf32, #tpu.memory_space<vmem>>, vector<1x8x8xf32>
    %90 = vector.shape_cast %89 : vector<1x8x8xf32> to vector<8x8xf32>
    %c510_i32 = arith.constant 510 : i32
    %91 = tpu.dynamic_rotate %77 by %c510_i32 dim 1 : vector<8x512xf32>, i32 -> vector<8x512xf32>
    %c7_65 = arith.constant 7 : index
    %c0_66 = arith.constant 0 : index
    %92 = vector.load %arg2[%c7_65, %c0_66] : memref<8x512xf32, #tpu.memory_space<vmem>>, vector<1x512xf32>
    %93 = vector.broadcast %92 : vector<1x512xf32> to vector<8x512xf32>
    %94 = arith.mulf %91, %93 : vector<8x512xf32>
    %cst_67 = arith.constant dense<0.000000e+00> : vector<8x512xf32>
    %95 = tpu.matmul %90, %94, %cst_67 {dimension_numbers = #tpu.dot_dimension_numbers<[1], [0], [0], [1], [0, 0, 1, 1], [], []>} : vector<8x8xf32>, vector<8x512xf32>, vector<8x512xf32> -> vector<8x512xf32>
    %96 = arith.addf %88, %95 : vector<8x512xf32>
    %97 = vector.broadcast %5 : vector<8x1xf32> to vector<8x512xf32>
    %98 = arith.mulf %96, %97 : vector<8x512xf32>
    %99 = vector.broadcast %6 : vector<8x1xf32> to vector<8x512xf32>
    %100 = arith.addf %98, %99 : vector<8x512xf32>
    %101 = arith.addf %100, %0 : vector<8x512xf32>
    %cst_68 = arith.constant 0.000000e+00 : f32
    %102 = vector.broadcast %cst_68 : f32 to vector<8x512xf32>
    %103 = arith.maximumf %101, %102 : vector<8x512xf32>
    %c0_69 = arith.constant 0 : index
    %c0_70 = arith.constant 0 : index
    %104 = vector.load %arg5[%c0_69, %c0_70] : memref<4x8xf32, #tpu.memory_space<vmem>>, vector<4x8xf32>
    %cst_71 = arith.constant dense<0.000000e+00> : vector<4x512xf32>
    %105 = tpu.matmul %104, %103, %cst_71 {dimension_numbers = #tpu.dot_dimension_numbers<[1], [0], [0], [1], [0, 0, 1, 1], [], []>} : vector<4x8xf32>, vector<8x512xf32>, vector<4x512xf32> -> vector<4x512xf32>
    %c0_72 = arith.constant 0 : index
    %c0_73 = arith.constant 0 : index
    %106 = vector.load %arg6[%c0_72, %c0_73] : memref<4x1xf32, #tpu.memory_space<vmem>>, vector<4x1xf32>
    %107 = vector.broadcast %106 : vector<4x1xf32> to vector<4x512xf32>
    %108 = arith.addf %105, %107 : vector<4x512xf32>
    %c0_74 = arith.constant 0 : index
    %c0_75 = arith.constant 0 : index
    %109 = vector.load %arg7[%c0_74, %c0_75] : memref<4x512xf32, #tpu.memory_space<vmem>>, vector<4x512xf32>
    tpu.vector_store %arg7[%c0_74, %c0_75], %108 {strides = array<i32>} : memref<4x512xf32, #tpu.memory_space<vmem>>, vector<4x512xf32>,
    return
  }
  func.func @transform_0(%arg0: i32) -> (i32, i32) {
    %c0_i32 = arith.constant 0 : i32
    %c0_i32_0 = arith.constant 0 : i32
    return %c0_i32, %arg0 : i32, i32
  }
  func.func @transform_1(%arg0: i32) -> (i32, i32) {
    %c0_i32 = arith.constant 0 : i32
    %c0_i32_0 = arith.constant 0 : i32
    %c0_i32_1 = arith.constant 0 : i32
    return %c0_i32, %c0_i32_0 : i32, i32
  }
  func.func @transform_2(%arg0: i32) -> (i32, i32, i32) {
    %c0_i32 = arith.constant 0 : i32
    %c0_i32_0 = arith.constant 0 : i32
    %c0_i32_1 = arith.constant 0 : i32
    %c0_i32_2 = arith.constant 0 : i32
    return %c0_i32, %c0_i32_0, %c0_i32_1 : i32, i32, i32
  }
  func.func @transform_3(%arg0: i32) -> (i32, i32) {
    %c0_i32 = arith.constant 0 : i32
    %c0_i32_0 = arith.constant 0 : i32
    %c0_i32_1 = arith.constant 0 : i32
    return %c0_i32, %c0_i32_0 : i32, i32
  }
  func.func @transform_4(%arg0: i32) -> (i32, i32) {
    %c0_i32 = arith.constant 0 : i32
    %c0_i32_0 = arith.constant 0 : i32
    %c0_i32_1 = arith.constant 0 : i32
    return %c0_i32, %c0_i32_0 : i32, i32
  }
  func.func @transform_5(%arg0: i32) -> (i32, i32) {
    %c0_i32 = arith.constant 0 : i32
    %c0_i32_0 = arith.constant 0 : i32
    %c0_i32_1 = arith.constant 0 : i32
    return %c0_i32, %c0_i32_0 : i32, i32
  }
  func.func @transform_6(%arg0: i32) -> (i32, i32) {
    %c0_i32 = arith.constant 0 : i32
    %c0_i32_0 = arith.constant 0 : i32
    return %c0_i32, %arg0 : i32, i32
  }
}

</mosaic_0001>

<bundles_post_ra>
// kernel: tpu_custom_call.1
= control target key start
LH: loop header
LB: loop body
LE: loop exit
PB: predicated region body
PF: predicated region fallthrough
CT: control target
= control target key end

     0   :  { %11 = vsyncpa [#allocation3], 0  ;;  %s2312_s0 = inlined_call_operand.vmem [shape: f32[8,1024], index: 0, kind: input, shape index: {}]   ;;  %s2313_s1 = inlined_call_operand.vmem [shape: f32[8,512], index: 1, kind: input, shape index: {}]   ;;  %s2314_s2 = inlined_call_operand.vmem [shape: f32[12,8,8], index: 2, kind: input, shape index: {}]   ;;  %s2315_s3 = inlined_call_operand.vmem [shape: f32[8,8], index: 3, kind: input, shape index: {}]   ;;  %s2316_s4 = inlined_call_operand.vmem [shape: f32[4,8], index: 4, kind: input, shape index: {}]   ;;  %s2317_s5 = inlined_call_operand.vmem [shape: f32[4,1], index: 5, kind: input, shape index: {}]   ;;  %s2318_s6 = inlined_call_operand.hbm [shape: f32[4,1024], index: 6, kind: output, shape index: {}]  }
   0x1   :  { %13 = vsyncpa [#allocation3 + $0x1], 0  ;;  %s2023_s21 = smov 0   ;;  %s2025_s22 = smov 0  }
   0x2   :  { %s2027_s23 = smov 0   ;;  %s2029_s24 = smov 0  }
   0x3 LB: > { %s2044_s25 = sadd.s32 4294967295, %s1972_s24   ;;  %s1767_s26 = sadd.s32 4294967294, %s1972_s24   ;;  %s1972_s24 = sphi %s2029_s24, %s2324_s24   ;;  %s1968_s23 = sphi %s2027_s23, %s2323_s23   ;;  %s1964_s22 = sphi %s2025_s22, %s2322_s22   ;;  %s1960_s21 = sphi %s2023_s21, %s2321_s21  }
   0x4   : > { %s2048_s27 = sadd.s32 1, %s1972_s24   ;;  %s157_s28 = sadd.s32 1, %s1968_s23 }
   0x5   : > { %s154_s29 = ssub.s32 %s1972_s24, %s2048_s27  ;;  %p167_p0 = scmp.ne.s32.totalorder %s1968_s23, %s1964_s22 }
   0x6   : > { %p155_p1 = scmp.eq.s32.totalorder %s154_s29, 0  ;;  %p168_p2 = scmp.eq.s32.totalorder %s2044_s25, 1 }
   0x7   : > { %p173_p3 = scmp.ne.s32.totalorder %s1964_s22, %s1960_s21  ;;  %p174_p4 = scmp.eq.s32.totalorder %s1767_s26, 1 }
   0x8   : > { %s2059_s30 = scalar_select %p155_p1, %s1968_s23, %s157_s28  }
   0x9   : > { %p2061_p5 = por %p168_p2, %p167_p0  ;;  %p2065_p6 = por %p174_p4, %p173_p3 }
   0xa   : > { %p1770_p7 = scmp.ge.s32.totalorder %s1972_s24, 1  ;;  %p216_p8 = scmp.lt.s32.totalorder %s1972_s24, 3 }
   0xc   : > { %p217_p9 = pnand %p1770_p7, %p216_p8 }
   0xd   : > { %s1772_s9 = sshll.u32 (!%p217_p9), %s2044_s25, 2  ;;  %s1974_s14 = smov (!%p217_p9), 16  }
   0xe   : > { %220 = sbr.rel (%p217_p9) target bundleno = 1252 (0x4e4), region = 44  ;;  %p247_p10 = scmp.lt.s32.totalorder (!%p217_p9), %s1772_s9, 7 }
   0xf   : > { %s1975_s15 = smov (!%p217_p9), 112   ;;  %s1982_s11 = smov (!%p217_p9), 96  }
  0x10   : > { %s1984_s28 = smov (!%p217_p9), 2   ;;  %s1985_s29 = smov (!%p217_p9), 126  }
  0x11   : > { %s1930_s26 = scalar_lea.hbm (!%p217_p9), %s2318_s6, 32 }
  0x13   : > { %s2326_s9 = smov (!%p247_p10, %s1772_s9), 7  ;;  %v1774_v4 = vld [vmem:[%s2314_s2 + $0x8] sm:$0xff]  ;;  %vm290_vm0 = vcmask 64512   ;;  %v2105_v5 = vld [vmem:[%s2315_s3] sm:$0xff]  ;;  %v1976_v6 = vmov 0   ;;  %v267_v7 = vlaneseq  ;;  %v1783_v44 = vld [vmem:[%s2314_s2 + $0x10] sm:$0xff] }
  0x14   : > { %s1773_s10 = sshll.u32 %s2326_s9, 3  ;;  %1903 = vset.pattern.permute.xlu2 %v1976_v6  ;;  %v274_v11 = vld [vmem:[%s2313_s1] ss:$8 sm:$0xf]  ;;  %vm1684_vm9 = vcmask 1043456  }
  0x15   : > { %s250_s13 = scalar_lea.vmem %s2312_s0, %s1773_s10  ;;  %v2109_v10 = vand.u32 127, %v267_v7  ;;  %v276_v13 = vperm.slane %v274_v11, 0  ;;  %v277_v14 = vperm.slane %v274_v11, 1  ;;  %v278_v15 = vperm.slane %v274_v11, 2  ;;  %v258_v27 = vld [vmem:[%s2314_s2] sm:$0xff]  ;;  %s1981_s10 = smov 32  }
  0x16   : > { %v2075_v0 = vld [vmem:[%s250_s13 + $0x18] sm:$0xff]  ;;  %v2077_v1 = vld [vmem:[%s250_s13 + $0x8] sm:$0xff]  ;;  %v2081_v2 = vld [vmem:[%s250_s13] sm:$0xff]  ;;  %v279_v16 = vperm.slane %v274_v11, 3 }
  0x17   : > { %265 = vrot.lane.b32.xlu1 %v2075_v0, %s1974_s14  ;;  %261 = vrot.lane.b32.xlu0 %v2077_v1, %s1974_s14  ;;  %v2083_v3 = vld [vmem:[%s250_s13 + $0x10] sm:$0xff]  ;;  %vm269_vm1 = vcmp.lt.s32.totalorder %v2109_v10, 16  ;;  %vm467_vm2 = vcmp.lt.s32.totalorder %v2109_v10, 112  ;;  %s1977_s13 = smov 1   ;;  %vm597_vm3 = vcmp.lt.s32.totalorder %v2109_v10, 1  ;;  %vm795_vm4 = vcmp.lt.s32.totalorder %v2109_v10, 127 }
  0x18   : > { %459 = vrot.lane.b32.xlu2 %v2081_v2, %s1975_s15  ;;  %309 = vmatpush.msra.mxu0 %v2081_v2  ;;  %v1784_v28 = vld [vmem:[%s2313_s1 + $0x1] ss:$8 sm:$0xf]  ;;  %vm932_vm5 = vcmp.lt.s32.totalorder %v2109_v10, 32  ;;  %vm1130_vm6 = vcmp.lt.s32.totalorder %v2109_v10, 96  ;;  %vm1259_vm7 = vcmp.lt.s32.totalorder %v2109_v10, 2 }
  0x19   : > { %329 = vmatpush.msra.mxu1 %v2077_v1  ;;  %349 = vmatpush.msra.mxu2 %v2083_v3  ;;  %v478_v29 = vperm.slane %v1784_v28, 3  ;;  %v477_v30 = vperm.slane %v1784_v28, 2  ;;  %v475_v32 = vperm.slane %v1784_v28, 0  ;;  %v476_v33 = vperm.slane %v1784_v28, 1 }
  0x1a   : > { %369 = vmatpush.msra.mxu3 %v2075_v0  ;;  %1775 = vmatmul.msk.f32.vlgmr.msra.gmra.mxu0 %vm290_vm0, %v1774_v4  ;;  %vm1457_vm8 = vcmp.lt.s32.totalorder %v2109_v10, 126 }
  0x1b   : > { %1776 = vmatmul.msk.f32.vlgmr.msra.gmra.mxu1 %vm290_vm0, %v1774_v4  ;;  %1777 = vmatmul.msk.f32.vlgmr.msra.gmra.mxu2 %vm290_vm0, %v1774_v4 }
  0x1c   : > { %1778 = vmatmul.msk.f32.vlgmr.msra.gmra.mxu3 %vm290_vm0, %v1774_v4 }
  0x1f   : > { %263 = vrot.lane.b32.xlu0 %v2083_v3, %s1974_s14  ;;  %259 = vrot.lane.b32.xlu1 %v2081_v2, %s1974_s14  ;;  %s1978_s14 = smov 127  }
  0x20   : > { %463 = vrot.lane.b32.xlu2 %v2083_v3, %s1975_s15 }
  0x27   : > { %465 = vrot.lane.b32.xlu0 %v2075_v0, %s1975_s15  ;;  %461 = vrot.lane.b32.xlu1 %v2077_v1, %s1975_s15 }
  0x28   : > { %576 = vperm.xlu2 %1903, %v2105_v5  }
  0x72   : > { %v460_v12 = vpop.permute.xlu2 %459 }
  0x7a   : > { %v464_v31 = vpop.permute.xlu2 %463 }
  0x82   : > { %v577_v52 = vpop.permute.xlu2 %576 }
  0x89   : > { %v266_v8 = vpop.permute.xlu1 %265  ;;  %v262_v9 = vpop.permute.xlu0 %261 }
  0x91   : > { %v264_v17 = vpop.permute.xlu0 %263  ;;  %v260_v18 = vpop.permute.xlu1 %259 }
  0x92   : > { %v270_v19 = vsel %vm269_vm1, %v264_v17, %v266_v8  ;;  %v271_v20 = vsel %vm269_vm1, %v262_v9, %v264_v17  ;;  %v272_v21 = vsel %vm269_vm1, %v260_v18, %v262_v9  ;;  %v273_v22 = vsel %vm269_vm1, %v266_v8, %v260_v18  ;;  %v1791_v17 = vld [vmem:[%s2314_s2 + $0x20] sm:$0xff] }
  0x93   : > { %v284_v23 = vmul.f32 %v276_v13, %v273_v22  ;;  %v285_v24 = vmul.f32 %v277_v14, %v272_v21  ;;  %v286_v25 = vmul.f32 %v278_v15, %v271_v20  ;;  %v287_v26 = vmul.f32 %v279_v16, %v270_v19  ;;  %v1790_v21 = vld [vmem:[%s2313_s1 + $0x2] ss:$8 sm:$0xf] }
  0x94   : > { %v1979_v18 = vmov 2   ;;  %v1980_v19 = vmov 1   ;;  %v607_v22 = vperm.slane %v1790_v21, 2 }
  0x95   : > { %392 = vmatpush.msrb.mxu0 %v284_v23  ;;  %412 = vmatpush.msrb.mxu1 %v285_v24  ;;  %v608_v23 = vperm.slane %v1790_v21, 3 }
  0x96   : > { %432 = vmatpush.msrb.mxu2 %v286_v25  ;;  %452 = vmatpush.msrb.mxu3 %v287_v26  ;;  %v605_v25 = vperm.slane %v1790_v21, 0  ;;  %v606_v26 = vperm.slane %v1790_v21, 1 }
  0x97   : > { %1779 = vmatmul.msk.f32.vlgmr.msrb.gmra.mxu0 %vm290_vm0, %v258_v27  ;;  %1780 = vmatmul.msk.f32.vlgmr.msrb.gmra.mxu1 %vm290_vm0, %v258_v27  ;;  %v311_v45 = vpop.f32.mrf.mxu0 }
  0x98   : > { %1781 = vmatmul.msk.f32.vlgmr.msrb.gmra.mxu2 %vm290_vm0, %v258_v27  ;;  %1782 = vmatmul.msk.f32.vlgmr.msrb.gmra.mxu3 %vm290_vm0, %v258_v27  ;;  %v331_v46 = vpop.f32.mrf.mxu1 }
  0x99   : > { %v466_v34 = vpop.permute.xlu0 %465  ;;  %v462_v35 = vpop.permute.xlu1 %461  ;;  %1905 = vset.pattern.permute.xlu0 %v1979_v18  ;;  %1904 = vset.pattern.permute.xlu2 %v1980_v19 }
  0x9a   : > { %v471_v36 = vsel %vm467_vm2, %v466_v34, %v460_v12  ;;  %v468_v37 = vsel %vm467_vm2, %v464_v31, %v466_v34  ;;  %v469_v38 = vsel %vm467_vm2, %v462_v35, %v464_v31  ;;  %v470_v39 = vsel %vm467_vm2, %v460_v12, %v462_v35 }
  0x9b   : > { %v486_v40 = vmul.f32 %v478_v29, %v471_v36  ;;  %v485_v41 = vmul.f32 %v477_v30, %v468_v37  ;;  %v483_v42 = vmul.f32 %v475_v32, %v470_v39  ;;  %v484_v43 = vmul.f32 %v476_v33, %v469_v38  ;;  %v1789_v37 = vld [vmem:[%s2314_s2 + $0x18] sm:$0xff] }
  0x9d   : > { %505 = vmatpush.msra.mxu0 %v483_v42  ;;  %525 = vmatpush.msra.mxu1 %v484_v43 }
  0x9e   : > { %545 = vmatpush.msra.mxu2 %v485_v41  ;;  %565 = vmatpush.msra.mxu3 %v486_v40  ;;  %v351_v47 = vpop.f32.mrf.mxu2 }
  0x9f   : > { %1785 = vmatmul.msk.f32.vlgmr.msra.gmra.mxu0 %vm290_vm0, %v1783_v44  ;;  %1786 = vmatmul.msk.f32.vlgmr.msra.gmra.mxu1 %vm290_vm0, %v1783_v44  ;;  %v371_v48 = vpop.f32.mrf.mxu3 }
  0xa0   : > { %1787 = vmatmul.msk.f32.vlgmr.msra.gmra.mxu2 %vm290_vm0, %v1783_v44  ;;  %1788 = vmatmul.msk.f32.vlgmr.msra.gmra.mxu3 %vm290_vm0, %v1783_v44 }
 0x114   : > { %v394_v49 = vpop.f32.mrf.mxu0  ;;  %v414_v50 = vpop.f32.mrf.mxu1 }
 0x115   : > { %v395_v51 = vadd.f32 %v394_v49, %v311_v45  ;;  %v415_v53 = vadd.f32 %v414_v50, %v331_v46 }
 0x11b   : > { %v434_v54 = vpop.f32.mrf.mxu2  ;;  %v454_v55 = vpop.f32.mrf.mxu3 }
 0x11c   : > { %v507_v56 = vpop.f32.mrf.mxu0  ;;  %v527_v57 = vpop.f32.mrf.mxu1  ;;  %v455_v62 = vadd.f32 %v454_v55, %v371_v48  ;;  %v435_v7 = vadd.f32 %v434_v54, %v351_v47  ;;  %v1800_v47 = vld [vmem:[%s2314_s2 + $0x28] sm:$0xff] }
 0x11d   : > { %v570_v58 = vadd.f32 %v507_v56, %v395_v51  ;;  %v571_v59 = vadd.f32 %v527_v57, %v415_v53 }
 0x11f   : > { %v579_v60 = vadd.f32 %v577_v52, %v570_v58  ;;  %v580_v61 = vadd.f32 %v577_v52, %v571_v59 }
 0x121   : > { %v583_v63 = vmax.f32 %v579_v60, 0.0  ;;  %v584_v4 = vmax.f32 %v580_v61, 0.0 }
 0x123   : > { %v547_v8 = vpop.f32.mrf.mxu2  ;;  %v567_v9 = vpop.f32.mrf.mxu3  ;;  %591 = vrot.lane.b32.xlu0 %v584_v4, %s1977_s13  ;;  %637 = vmatpush.msrb.mxu0 %v583_v63 }
 0x124   : > { %v572_v11 = vadd.f32 %v547_v8, %v435_v7  ;;  %v573_v12 = vadd.f32 %v567_v9, %v455_v62  ;;  %657 = vmatpush.msrb.mxu1 %v584_v4  ;;  %1792 = vmatmul.msk.f32.vlgmr.msrb.gmra.mxu0 %vm290_vm0, %v1791_v17 }
 0x125   : > { %1793 = vmatmul.msk.f32.vlgmr.msrb.gmra.mxu1 %vm290_vm0, %v1791_v17 }
 0x126   : > { %v581_v13 = vadd.f32 %v577_v52, %v572_v11  ;;  %v582_v14 = vadd.f32 %v577_v52, %v573_v12 }
 0x128   : > { %v585_v15 = vmax.f32 %v581_v13, 0.0  ;;  %v586_v16 = vmax.f32 %v582_v14, 0.0 }
 0x12a   : > { %595 = vrot.lane.b32.xlu2 %v586_v16, %s1977_s13  ;;  %677 = vmatpush.msrb.mxu2 %v585_v15 }
 0x12b   : > { %697 = vmatpush.msrb.mxu3 %v586_v16  ;;  %593 = vrot.lane.b32.xlu1 %v585_v15, %s1977_s13 }
 0x12c   : > { %589 = vrot.lane.b32.xlu0 %v583_v63, %s1977_s13  ;;  %1794 = vmatmul.msk.f32.vlgmr.msrb.gmra.mxu2 %vm290_vm0, %v1791_v17 }
 0x12d   : > { %1795 = vmatmul.msk.f32.vlgmr.msrb.gmra.mxu3 %vm290_vm0, %v1791_v17 }
 0x132   : > { %791 = vrot.lane.b32.xlu2 %v585_v15, %s1978_s14 }
 0x133   : > { %787 = vrot.lane.b32.xlu1 %v583_v63, %s1978_s14 }
 0x134   : > { %793 = vrot.lane.b32.xlu0 %v586_v16, %s1978_s14 }
 0x13a   : > { %903 = vperm.xlu2 %1904, %v2105_v5  }
 0x13b   : > { %789 = vrot.lane.b32.xlu1 %v584_v4, %s1978_s14 }
 0x13c   : > { %911 = vperm.xlu0 %1905, %v2105_v5  }
 0x144   : > { %1909 = vset.pattern.permute.xlu0 %v1976_v6  ;;  %v1801_v6 = vld [vmem:[%s2313_s1 + $0x3] ss:$8 sm:$0xf] }
 0x145   : > { %v805_v38 = vperm.slane %v1801_v6, 2  ;;  %v806_v39 = vperm.slane %v1801_v6, 3  ;;  %v803_v48 = vperm.slane %v1801_v6, 0  ;;  %v804_v49 = vperm.slane %v1801_v6, 1 }
 0x184   : > { %v596_v24 = vpop.permute.xlu2 %595 }
 0x18c   : > { %v792_v41 = vpop.permute.xlu2 %791 }
 0x194   : > { %v904_v9 = vpop.permute.xlu2 %903 }
 0x195   : > { %v592_v20 = vpop.permute.xlu0 %591 }
 0x19d   : > { %v594_v27 = vpop.permute.xlu1 %593 }
 0x19e   : > { %v598_v28 = vsel %vm597_vm3, %v594_v27, %v596_v24  ;;  %v599_v29 = vsel %vm597_vm3, %v592_v20, %v594_v27  ;;  %v590_v30 = vpop.permute.xlu0 %589 }
 0x19f   : > { %v615_v31 = vmul.f32 %v607_v22, %v599_v29  ;;  %v616_v32 = vmul.f32 %v608_v23, %v598_v28  ;;  %v600_v33 = vsel %vm597_vm3, %v590_v30, %v592_v20  ;;  %v601_v34 = vsel %vm597_vm3, %v596_v24, %v590_v30 }
 0x1a0   : > { %v613_v35 = vmul.f32 %v605_v25, %v601_v34  ;;  %v614_v36 = vmul.f32 %v606_v26, %v600_v33  ;;  %v1983_v34 = vmov 3  }
 0x1a1   : > { %760 = vmatpush.msra.mxu2 %v615_v31  ;;  %780 = vmatpush.msra.mxu3 %v616_v32  ;;  %v639_v55 = vpop.f32.mrf.mxu0  ;;  %v1808_v32 = vld [vmem:[%s2314_s2 + $0x38] sm:$0xff] }
 0x1a2   : > { %720 = vmatpush.msra.mxu0 %v613_v35  ;;  %740 = vmatpush.msra.mxu1 %v614_v36  ;;  %v659_v57 = vpop.f32.mrf.mxu1  ;;  %v1807_v35 = vld [vmem:[%s2313_s1 + $0x4] ss:$8 sm:$0xf] }
 0x1a3   : > { %1797 = vmatmul.msk.f32.vlgmr.msra.gmra.mxu1 %vm290_vm0, %v1789_v37  ;;  %1798 = vmatmul.msk.f32.vlgmr.msra.gmra.mxu2 %vm290_vm0, %v1789_v37  ;;  %v942_v6 = vperm.slane %v1807_v35, 2 }
 0x1a4   : > { %1799 = vmatmul.msk.f32.vlgmr.msra.gmra.mxu3 %vm290_vm0, %v1789_v37  ;;  %1796 = vmatmul.msk.f32.vlgmr.msra.gmra.mxu0 %vm290_vm0, %v1789_v37  ;;  %v941_v37 = vperm.slane %v1807_v35, 1 }
 0x1a5   : > { %v788_v40 = vpop.permute.xlu1 %787  ;;  %1906 = vset.pattern.permute.xlu1 %v1983_v34 }
 0x1a6   : > { %v794_v42 = vpop.permute.xlu0 %793 }
 0x1a7   : > { %v796_v43 = vsel %vm795_vm4, %v792_v41, %v794_v42  ;;  %v799_v44 = vsel %vm795_vm4, %v794_v42, %v788_v40 }
 0x1a8   : > { %v813_v45 = vmul.f32 %v805_v38, %v796_v43  ;;  %v814_v46 = vmul.f32 %v806_v39, %v799_v44  ;;  %v1806_v44 = vld [vmem:[%s2314_s2 + $0x30] sm:$0xff] }
 0x1aa   : > { %873 = vmatpush.msrb.mxu2 %v813_v45  ;;  %893 = vmatpush.msrb.mxu3 %v814_v46  ;;  %v1818_v45 = vld [vmem:[%s2313_s1 + $0x5] ss:$8 sm:$0xf]  ;;  %v940_v46 = vperm.slane %v1807_v35, 0 }
 0x1ab   : > { %1804 = vmatmul.msk.f32.vlgmr.msrb.gmra.mxu2 %vm290_vm0, %v1800_v47 }
 0x1ac   : > { %1805 = vmatmul.msk.f32.vlgmr.msrb.gmra.mxu3 %vm290_vm0, %v1800_v47 }
 0x1ad   : > { %v790_v50 = vpop.permute.xlu1 %789 }
 0x1ae   : > { %v797_v51 = vsel %vm795_vm4, %v790_v50, %v792_v41  ;;  %v798_v52 = vsel %vm795_vm4, %v788_v40, %v790_v50  ;;  %v912_v18 = vpop.permute.xlu0 %911  ;;  %v1141_v50 = vperm.slane %v1818_v45, 3 }
 0x1af   : > { %v811_v53 = vmul.f32 %v803_v48, %v798_v52  ;;  %v812_v54 = vmul.f32 %v804_v49, %v797_v51  ;;  %v679_v56 = vpop.f32.mrf.mxu2  ;;  %v1138_v48 = vperm.slane %v1818_v45, 0 }
 0x1b0   : > { %v699_v58 = vpop.f32.mrf.mxu3 }
 0x1b1   : > { %833 = vmatpush.msrb.mxu0 %v811_v53  ;;  %853 = vmatpush.msrb.mxu1 %v812_v54 }
 0x1b2   : > { %1802 = vmatmul.msk.f32.vlgmr.msrb.gmra.mxu0 %vm290_vm0, %v1800_v47  ;;  %1803 = vmatmul.msk.f32.vlgmr.msrb.gmra.mxu1 %vm290_vm0, %v1800_v47  ;;  %v943_v47 = vperm.slane %v1807_v35, 3 }
 0x220   : > { %v742_v61 = vpop.f32.mrf.mxu1 }
 0x221   : > { %v722_v59 = vpop.f32.mrf.mxu0  ;;  %v743_v7 = vadd.f32 %v742_v61, %v659_v57  ;;  %v1139_v61 = vperm.slane %v1818_v45, 1 }
 0x222   : > { %v723_v4 = vadd.f32 %v722_v59, %v639_v55 }
 0x226   : > { %v762_v60 = vpop.f32.mrf.mxu2 }
 0x227   : > { %v782_v62 = vpop.f32.mrf.mxu3  ;;  %v763_v63 = vadd.f32 %v762_v60, %v679_v56 }
 0x228   : > { %v783_v11 = vadd.f32 %v782_v62, %v699_v58  ;;  %v1140_v62 = vperm.slane %v1818_v45, 2  ;;  %v1987_v45 = vmov 5  }
 0x229   : > { %1908 = vset.pattern.permute.xlu2 %v1987_v45 }
 0x22e   : > { %v875_v8 = vpop.f32.mrf.mxu2 }
 0x22f   : > { %v835_v12 = vpop.f32.mrf.mxu0  ;;  %v855_v13 = vpop.f32.mrf.mxu1  ;;  %v900_v14 = vadd.f32 %v875_v8, %v763_v63 }
 0x230   : > { %v898_v15 = vadd.f32 %v835_v12, %v723_v4  ;;  %v899_v16 = vadd.f32 %v855_v13, %v743_v7  ;;  %v895_v17 = vpop.f32.mrf.mxu3 }
 0x231   : > { %v901_v19 = vadd.f32 %v895_v17, %v783_v11  ;;  %v908_v20 = vmul.f32 %v904_v9, %v900_v14  ;;  %v1817_v11 = vld [vmem:[%s2314_s2 + $0x40] sm:$0xff] }
 0x232   : > { %v906_v21 = vmul.f32 %v904_v9, %v898_v15  ;;  %v907_v22 = vmul.f32 %v904_v9, %v899_v16 }
 0x233   : > { %v909_v23 = vmul.f32 %v904_v9, %v901_v19  ;;  %v916_v24 = vadd.f32 %v912_v18, %v908_v20 }
 0x234   : > { %v915_v25 = vadd.f32 %v912_v18, %v907_v22  ;;  %v914_v26 = vadd.f32 %v912_v18, %v906_v21 }
 0x235   : > { %v917_v27 = vadd.f32 %v912_v18, %v909_v23  ;;  %v920_v28 = vmax.f32 %v916_v24, 0.0 }
 0x236   : > { %v919_v29 = vmax.f32 %v915_v25, 0.0  ;;  %v918_v30 = vmax.f32 %v914_v26, 0.0 }
 0x237   : > { %v921_v31 = vmax.f32 %v917_v27, 0.0  ;;  %1012 = vmatpush.msra.mxu2 %v920_v28 }
 0x238   : > { %926 = vrot.lane.b32.xlu1 %v919_v29, %s1981_s10  ;;  %992 = vmatpush.msra.mxu1 %v919_v29 }
 0x239   : > { %1032 = vmatpush.msra.mxu3 %v921_v31  ;;  %1122 = vrot.lane.b32.xlu0 %v918_v30, %s1982_s11 }
 0x23a   : > { %924 = vrot.lane.b32.xlu2 %v918_v30, %s1981_s10  ;;  %972 = vmatpush.msra.mxu0 %v918_v30 }
 0x23b   : > { %1810 = vmatmul.msk.f32.vlgmr.msra.gmra.mxu1 %vm290_vm0, %v1808_v32  ;;  %1811 = vmatmul.msk.f32.vlgmr.msra.gmra.mxu2 %vm290_vm0, %v1808_v32 }
 0x23c   : > { %1812 = vmatmul.msk.f32.vlgmr.msra.gmra.mxu3 %vm290_vm0, %v1808_v32  ;;  %1809 = vmatmul.msk.f32.vlgmr.msra.gmra.mxu0 %vm290_vm0, %v1808_v32 }
 0x240   : > { %930 = vrot.lane.b32.xlu1 %v921_v31, %s1981_s10 }
 0x241   : > { %1124 = vrot.lane.b32.xlu0 %v919_v29, %s1982_s11 }
 0x242   : > { %928 = vrot.lane.b32.xlu2 %v920_v28, %s1981_s10  ;;  %s1849_s10 = sshll.u32 %s2044_s25, 4 }
 0x243   : > { %s1703_s13 = scalar_lea.hbm %s2318_s6, %s1849_s10 }
 0x244   : > { %s1707_s16 = sshll.u32 %s1703_s13, 4  ;;  %s1708_s16 = int_to_ptr.hbm [resolvable:$true] %s1707_s16 }
 0x245   : > { %s1924_s17 = sshra.s32 %s1708_s16, 4  ;;  %s1925_s17 = int_to_ptr.hbm [resolvable:$true] %s1924_s17 }
 0x246   : > { %s1926_s18 = scalar_lea.hbm %s1925_s17, 16  ;;  %p1931_p0 = scmp.lt.s32.totalorder %s1925_s17, %s2318_s6 }
 0x247   : > { %p1927_p11 = scmp.ne.s32.totalorder %s1925_s17, %s1926_s18  ;;  %p1932_p1 = scmp.lt.s32.totalorder %s1930_s26, %s1926_s18 }
 0x248   : > { %1126 = vrot.lane.b32.xlu1 %v920_v28, %s1982_s11 }
 0x249   : > { %p1928_p12 = pnand %p1927_p11, %p2061_p5  ;;  %p1933_p2 = por %p1932_p1, %p1931_p0 }
 0x24a   : > { %1128 = vrot.lane.b32.xlu2 %v921_v31, %s1982_s11 }
 0x24b   : > { %p1929_p13 = pneg %p1928_p12 }
 0x24d   : > { %p1934_p3 = pnand %p1933_p2, %p1929_p13 }
 0x250   : > { %1238 = vperm.xlu1 %1906, %v2105_v5  }
 0x294   : > { %v925_v33 = vpop.permute.xlu2 %924 }
 0x29c   : > { %v929_v36 = vpop.permute.xlu2 %928 }
 0x2a4   : > { %v1129_v49 = vpop.permute.xlu2 %1128 }
 0x2aa   : > { %v927_v38 = vpop.permute.xlu1 %926 }
 0x2ab   : > { %v934_v39 = vsel %vm932_vm5, %v927_v38, %v929_v36  ;;  %v935_v40 = vsel %vm932_vm5, %v925_v33, %v927_v38  ;;  %v1123_v41 = vpop.permute.xlu0 %1122 }
 0x2ac   : > { %v949_v42 = vmul.f32 %v941_v37, %v935_v40  ;;  %v950_v43 = vmul.f32 %v942_v6, %v934_v39  ;;  %v1134_v52 = vsel %vm1130_vm6, %v1129_v49, %v1123_v41  ;;  %v1825_v40 = vld [vmem:[%s2314_s2 + $0x50] sm:$0xff] }
 0x2ad   : > { %v1149_v60 = vmul.f32 %v1141_v50, %v1134_v52 }
 0x2ae   : > { %1075 = vmatpush.msrb.mxu1 %v949_v42  ;;  %1095 = vmatpush.msrb.mxu2 %v950_v43  ;;  %v1824_v43 = vld [vmem:[%s2313_s1 + $0x6] ss:$8 sm:$0xf] }
 0x2af   : > { %1814 = vmatmul.msk.f32.vlgmr.msrb.gmra.mxu1 %vm290_vm0, %v1806_v44  ;;  %1815 = vmatmul.msk.f32.vlgmr.msrb.gmra.mxu2 %vm290_vm0, %v1806_v44 }
 0x2b2   : > { %v931_v51 = vpop.permute.xlu1 %930 }
 0x2b3   : > { %v933_v53 = vsel %vm932_vm5, %v929_v36, %v931_v51  ;;  %v936_v54 = vsel %vm932_vm5, %v931_v51, %v925_v33  ;;  %v1125_v55 = vpop.permute.xlu0 %1124 }
 0x2b4   : > { %v948_v56 = vmul.f32 %v940_v46, %v936_v54  ;;  %v951_v57 = vmul.f32 %v943_v47, %v933_v53  ;;  %v1133_v58 = vsel %vm1130_vm6, %v1123_v41, %v1125_v55  ;;  %v1268_v46 = vperm.slane %v1824_v43, 1  ;;  %v1823_v54 = vld [vmem:[%s2314_s2 + $0x48] sm:$0xff] }
 0x2b5   : > { %v1146_v59 = vmul.f32 %v1138_v48, %v1133_v58  ;;  %v1269_v47 = vperm.slane %v1824_v43, 2 }
 0x2b6   : > { %1055 = vmatpush.msrb.mxu0 %v948_v56  ;;  %1115 = vmatpush.msrb.mxu3 %v951_v57 }
 0x2b7   : > { %1816 = vmatmul.msk.f32.vlgmr.msrb.gmra.mxu3 %vm290_vm0, %v1806_v44  ;;  %1813 = vmatmul.msk.f32.vlgmr.msrb.gmra.mxu0 %vm290_vm0, %v1806_v44  ;;  %v1986_v44 = vmov 4  }
 0x2b8   : > { %1168 = vmatpush.msra.mxu0 %v1146_v59  ;;  %1228 = vmatpush.msra.mxu3 %v1149_v60  ;;  %v994_v12 = vpop.f32.mrf.mxu1 }
 0x2b9   : > { %v974_v13 = vpop.f32.mrf.mxu0  ;;  %1907 = vset.pattern.permute.xlu1 %v1986_v44 }
 0x2ba   : > { %v1127_v63 = vpop.permute.xlu1 %1126 }
 0x2bb   : > { %v1131_v4 = vsel %vm1130_vm6, %v1127_v63, %v1129_v49  ;;  %v1132_v7 = vsel %vm1130_vm6, %v1125_v55, %v1127_v63  ;;  %v1267_v55 = vperm.slane %v1824_v43, 0 }
 0x2bc   : > { %v1147_v8 = vmul.f32 %v1139_v61, %v1132_v7  ;;  %v1148_v9 = vmul.f32 %v1140_v62, %v1131_v4  ;;  %v1835_v61 = vld [vmem:[%s2313_s1 + $0x7] ss:$8 sm:$0xf] }
 0x2bd   : > { %v1467_v62 = vperm.slane %v1835_v61, 2  ;;  %v1468_v63 = vperm.slane %v1835_v61, 3 }
 0x2be   : > { %1188 = vmatpush.msra.mxu1 %v1147_v8  ;;  %1208 = vmatpush.msra.mxu2 %v1148_v9  ;;  %v1014_v14 = vpop.f32.mrf.mxu2 }
 0x2bf   : > { %1820 = vmatmul.msk.f32.vlgmr.msra.gmra.mxu1 %vm290_vm0, %v1817_v11  ;;  %1821 = vmatmul.msk.f32.vlgmr.msra.gmra.mxu2 %vm290_vm0, %v1817_v11  ;;  %v1034_v15 = vpop.f32.mrf.mxu3 }
 0x2c0   : > { %1822 = vmatmul.msk.f32.vlgmr.msra.gmra.mxu3 %vm290_vm0, %v1817_v11  ;;  %1819 = vmatmul.msk.f32.vlgmr.msra.gmra.mxu0 %vm290_vm0, %v1817_v11 }
 0x2c2   : > { %v1239_v23 = vpop.permute.xlu1 %1238 }
 0x32c   : > { %v1077_v16 = vpop.f32.mrf.mxu1 }
 0x32d   : > { %v1078_v21 = vadd.f32 %v1077_v16, %v994_v12 }
 0x332   : > { %v1097_v18 = vpop.f32.mrf.mxu2 }
 0x333   : > { %v1098_v29 = vadd.f32 %v1097_v18, %v1014_v14  ;;  %v1465_v14 = vperm.slane %v1835_v61, 0 }
 0x334   : > { %v1057_v17 = vpop.f32.mrf.mxu0 }
 0x335   : > { %v1058_v19 = vadd.f32 %v1057_v17, %v974_v13  ;;  %v1834_v13 = vld [vmem:[%s2314_s2 + $0x58] sm:$0xff] }
 0x33a   : > { %v1117_v20 = vpop.f32.mrf.mxu3 }
 0x33b   : > { %v1118_v31 = vadd.f32 %v1117_v20, %v1034_v15  ;;  %v1466_v15 = vperm.slane %v1835_v61, 1 }
 0x33c   : > { %v1190_v22 = vpop.f32.mrf.mxu1 }
 0x33d   : > { %v1234_v24 = vadd.f32 %v1190_v22, %v1078_v21  ;;  %v1170_v25 = vpop.f32.mrf.mxu0 }
 0x33e   : > { %v1233_v26 = vadd.f32 %v1170_v25, %v1058_v19 }
 0x33f   : > { %v1242_v27 = vadd.f32 %v1239_v23, %v1234_v24 }
 0x340   : > { %v1241_v28 = vadd.f32 %v1239_v23, %v1233_v26 }
 0x341   : > { %v1246_v30 = vmax.f32 %v1242_v27, 0.0 }
 0x342   : > { %v1245_v32 = vmax.f32 %v1241_v28, 0.0  ;;  %v1210_v33 = vpop.f32.mrf.mxu2 }
 0x343   : > { %v1235_v34 = vadd.f32 %v1210_v33, %v1098_v29  ;;  %v1230_v35 = vpop.f32.mrf.mxu3  ;;  %1253 = vrot.lane.b32.xlu1 %v1246_v30, %s1984_s28  ;;  %1319 = vmatpush.msrb.mxu1 %v1246_v30 }
 0x344   : > { %v1236_v36 = vadd.f32 %v1230_v35, %v1118_v31  ;;  %1299 = vmatpush.msrb.mxu0 %v1245_v32  ;;  %1827 = vmatmul.msk.f32.vlgmr.msrb.gmra.mxu1 %vm290_vm0, %v1825_v40 }
 0x345   : > { %v1243_v37 = vadd.f32 %v1239_v23, %v1235_v34  ;;  %1826 = vmatmul.msk.f32.vlgmr.msrb.gmra.mxu0 %vm290_vm0, %v1825_v40 }
 0x346   : > { %v1244_v6 = vadd.f32 %v1239_v23, %v1236_v36  ;;  %v1589_v23 = vld [vmem:[%s2317_s5] sm:$0xf] }
 0x347   : > { %v1247_v38 = vmax.f32 %v1243_v37, 0.0 }
 0x348   : > { %v1248_v39 = vmax.f32 %v1244_v6, 0.0 }
 0x349   : > { %1255 = vrot.lane.b32.xlu2 %v1247_v38, %s1984_s28  ;;  %1339 = vmatpush.msrb.mxu2 %v1247_v38 }
 0x34a   : > { %1257 = vrot.lane.b32.xlu0 %v1248_v39, %s1984_s28  ;;  %1359 = vmatpush.msrb.mxu3 %v1248_v39 }
 0x34b   : > { %1453 = vrot.lane.b32.xlu1 %v1247_v38, %s1985_s29  ;;  %1828 = vmatmul.msk.f32.vlgmr.msrb.gmra.mxu2 %vm290_vm0, %v1825_v40 }
 0x34c   : > { %1829 = vmatmul.msk.f32.vlgmr.msrb.gmra.mxu3 %vm290_vm0, %v1825_v40 }
 0x351   : > { %1449 = vrot.lane.b32.xlu2 %v1245_v32, %s1985_s29 }
 0x352   : > { %1455 = vrot.lane.b32.xlu0 %v1248_v39, %s1985_s29 }
 0x353   : > { %1565 = vperm.xlu1 %1907, %v2105_v5  }
 0x359   : > { %1251 = vrot.lane.b32.xlu2 %v1245_v32, %s1984_s28 }
 0x35a   : > { %1451 = vrot.lane.b32.xlu0 %v1246_v30, %s1985_s29  ;;  %s243_s29 = sand.u32 1, %s1964_s22  }
 0x35b   : > { %s1771_s9 = sshll.u32 %s243_s29, 4  ;;  %s1692_s25 = scalar_lea.sflag [#allocation3], %s243_s29 }
 0x35c   : > { %s245_s14 = scalar_lea.vmem [#allocation2], %s1771_s9 }
 0x35d   : > { %s1705_s15 = sshll.u32 %s245_s14, 4  ;;  %s1706_s15 = int_to_ptr.vmem [resolvable:$true] %s1705_s15 }
 0x361   : > { %1573 = vperm.xlu2 %1908, %v2105_v5   ;;  %v1270_v5 = vperm.slane %v1824_v43, 3 }
 0x362   : > { %1592 = vperm.xlu0 %1909, %v1589_v23  }
 0x3a3   : > { %v1256_v41 = vpop.permute.xlu2 %1255 }
 0x3ab   : > { %v1450_v42 = vpop.permute.xlu2 %1449 }
 0x3b3   : > { %v1252_v48 = vpop.permute.xlu2 %1251 }
 0x3b5   : > { %v1254_v49 = vpop.permute.xlu1 %1253 }
 0x3b6   : > { %v1261_v50 = vsel %vm1259_vm7, %v1254_v49, %v1256_v41  ;;  %v1262_v51 = vsel %vm1259_vm7, %v1252_v48, %v1254_v49 }
 0x3b7   : > { %v1276_v52 = vmul.f32 %v1268_v46, %v1262_v51  ;;  %v1277_v53 = vmul.f32 %v1269_v47, %v1261_v50 }
 0x3b9   : > { %1402 = vmatpush.msra.mxu1 %v1276_v52  ;;  %1422 = vmatpush.msra.mxu2 %v1277_v53 }
 0x3ba   : > { %1832 = vmatmul.msk.f32.vlgmr.msra.gmra.mxu2 %vm290_vm0, %v1823_v54  ;;  %1831 = vmatmul.msk.f32.vlgmr.msra.gmra.mxu1 %vm290_vm0, %v1823_v54 }
 0x3bb   : > { %v1574_v6 = vpop.permute.xlu2 %1573 }
 0x3bc   : > { %v1258_v56 = vpop.permute.xlu0 %1257 }
 0x3bd   : > { %v1260_v57 = vsel %vm1259_vm7, %v1256_v41, %v1258_v56  ;;  %v1263_v58 = vsel %vm1259_vm7, %v1258_v56, %v1252_v48  ;;  %v1454_v4 = vpop.permute.xlu1 %1453 }
 0x3be   : > { %v1275_v59 = vmul.f32 %v1267_v55, %v1263_v58  ;;  %v1278_v60 = vmul.f32 %v1270_v5, %v1260_v57  ;;  %v1588_v5 = vld [vmem:[%s2316_s4] sm:$0xf] }
 0x3c0   : > { %1382 = vmatpush.msra.mxu0 %v1275_v59  ;;  %1442 = vmatpush.msra.mxu3 %v1278_v60 }
 0x3c1   : > { %1833 = vmatmul.msk.f32.vlgmr.msra.gmra.mxu3 %vm290_vm0, %v1823_v54  ;;  %1830 = vmatmul.msk.f32.vlgmr.msra.gmra.mxu0 %vm290_vm0, %v1823_v54  ;;  %v1321_v24 = vpop.f32.mrf.mxu1 }
 0x3c2   : > { %v1301_v25 = vpop.f32.mrf.mxu0 }
 0x3c4   : > { %v1456_v7 = vpop.permute.xlu0 %1455 }
 0x3c5   : > { %v1458_v8 = vsel %vm1457_vm8, %v1454_v4, %v1456_v7  ;;  %v1461_v9 = vsel %vm1457_vm8, %v1456_v7, %v1450_v42  ;;  %v1566_v31 = vpop.permute.xlu1 %1565 }
 0x3c6   : > { %v1475_v11 = vmul.f32 %v1467_v62, %v1458_v8  ;;  %v1476_v12 = vmul.f32 %v1468_v63, %v1461_v9 }
 0x3c8   : > { %1535 = vmatpush.msrb.mxu2 %v1475_v11  ;;  %1555 = vmatpush.msrb.mxu3 %v1476_v12 }
 0x3c9   : > { %1838 = vmatmul.msk.f32.vlgmr.msrb.gmra.mxu2 %vm290_vm0, %v1834_v13  ;;  %1839 = vmatmul.msk.f32.vlgmr.msrb.gmra.mxu3 %vm290_vm0, %v1834_v13 }
 0x3cc   : > { %v1452_v16 = vpop.permute.xlu0 %1451 }
 0x3cd   : > { %v1459_v17 = vsel %vm1457_vm8, %v1452_v16, %v1454_v4  ;;  %v1460_v18 = vsel %vm1457_vm8, %v1450_v42, %v1452_v16 }
 0x3ce   : > { %v1473_v19 = vmul.f32 %v1465_v14, %v1460_v18  ;;  %v1474_v20 = vmul.f32 %v1466_v15, %v1459_v17  ;;  %v1341_v21 = vpop.f32.mrf.mxu2 }
 0x3cf   : > { %v1361_v22 = vpop.f32.mrf.mxu3 }
 0x3d0   : > { %1495 = vmatpush.msrb.mxu0 %v1473_v19  ;;  %1515 = vmatpush.msrb.mxu1 %v1474_v20 }
 0x3d1   : > { %1836 = vmatmul.msk.f32.vlgmr.msrb.gmra.mxu0 %vm290_vm0, %v1834_v13  ;;  %1837 = vmatmul.msk.f32.vlgmr.msrb.gmra.mxu1 %vm290_vm0, %v1834_v13 }
 0x437   : > { %v1404_v27 = vpop.f32.mrf.mxu1 }
 0x438   : > { %v1405_v34 = vadd.f32 %v1404_v27, %v1321_v24 }
 0x43d   : > { %v1424_v26 = vpop.f32.mrf.mxu2 }
 0x43e   : > { %v1384_v28 = vpop.f32.mrf.mxu0  ;;  %v1425_v29 = vadd.f32 %v1424_v26, %v1341_v21 }
 0x43f   : > { %v1385_v35 = vadd.f32 %v1384_v28, %v1301_v25 }
 0x444   : > { %v1444_v10 = vpop.f32.mrf.mxu3 }
 0x445   : > { %v1445_v30 = vadd.f32 %v1444_v10, %v1361_v22 }
 0x44c   : > { %v1537_v32 = vpop.f32.mrf.mxu2  ;;  %v1557_v33 = vpop.f32.mrf.mxu3 }
 0x44d   : > { %v1562_v36 = vadd.f32 %v1537_v32, %v1425_v29  ;;  %v1563_v37 = vadd.f32 %v1557_v33, %v1445_v30 }
 0x44e   : > { %v1497_v38 = vpop.f32.mrf.mxu0  ;;  %v1517_v39 = vpop.f32.mrf.mxu1 }
 0x44f   : > { %v1570_v40 = vmul.f32 %v1566_v31, %v1562_v36  ;;  %v1571_v41 = vmul.f32 %v1566_v31, %v1563_v37  ;;  %v1560_v42 = vadd.f32 %v1497_v38, %v1385_v35  ;;  %v1561_v43 = vadd.f32 %v1517_v39, %v1405_v34 }
 0x451   : > { %v1568_v44 = vmul.f32 %v1566_v31, %v1560_v42  ;;  %v1569_v45 = vmul.f32 %v1566_v31, %v1561_v43  ;;  %v1578_v46 = vadd.f32 %v1574_v6, %v1570_v40  ;;  %v1579_v47 = vadd.f32 %v1574_v6, %v1571_v41 }
 0x453   : > { %v1576_v48 = vadd.f32 %v1574_v6, %v1568_v44  ;;  %v1577_v49 = vadd.f32 %v1574_v6, %v1569_v45  ;;  %v1582_v50 = vadd.f32 %v1578_v46, %v2083_v3  ;;  %v1583_v51 = vadd.f32 %v1579_v47, %v2075_v0  ;;  %v1593_v0 = vpop.permute.xlu0 %1592 }
 0x455   : > { %v1580_v52 = vadd.f32 %v1576_v48, %v2081_v2  ;;  %v1581_v53 = vadd.f32 %v1577_v49, %v2077_v1  ;;  %v1586_v54 = vmax.f32 %v1582_v50, 0.0  ;;  %v1587_v55 = vmax.f32 %v1583_v51, 0.0 }
 0x457   : > { %v1584_v56 = vmax.f32 %v1580_v52, 0.0  ;;  %v1585_v57 = vmax.f32 %v1581_v53, 0.0  ;;  %1653 = vmatpush.msra.mxu2 %v1586_v54  ;;  %1673 = vmatpush.msra.mxu3 %v1587_v55 }
 0x458   : > { %1843 = vmatmul.msk.f32.vlgmr.msra.gmra.mxu3 %vm290_vm0, %v1588_v5  ;;  %1842 = vmatmul.msk.f32.vlgmr.msra.gmra.mxu2 %vm290_vm0, %v1588_v5 }
 0x459   : > { %1613 = vmatpush.msra.mxu0 %v1584_v56  ;;  %1633 = vmatpush.msra.mxu1 %v1585_v57 }
 0x45a   : > { %1841 = vmatmul.msk.f32.vlgmr.msra.gmra.mxu1 %vm290_vm0, %v1588_v5  ;;  %1840 = vmatmul.msk.f32.vlgmr.msra.gmra.mxu0 %vm290_vm0, %v1588_v5 }
 0x4d7   : > { %v1635_v1 = vpop.f32.mrf.mxu1  ;;  %v1615_v2 = vpop.f32.mrf.mxu0 }
 0x4d8   : > { %v1636_v3 = vadd.f32 %v1635_v1, %v1593_v0  ;;  %v1616_v58 = vadd.f32 %v1615_v2, %v1593_v0 }
 0x4da   : > { %v1682_v59 = vrot.slane %v1636_v3, 4 }
 0x4db   : > { %v1675_v60 = vpop.f32.mrf.mxu3  ;;  %v1655_v61 = vpop.f32.mrf.mxu2 }
 0x4dc   : > { %v1676_v62 = vadd.f32 %v1675_v60, %v1593_v0  ;;  %v1685_v63 = vsel %vm1684_vm9, %v1616_v58, %v1682_v59  ;;  %v1656_v7 = vadd.f32 %v1655_v61, %v1593_v0 }
 0x4dd   : > { %1689 = vst [vmem:[%s245_s14] sm:$0xff] %v1685_v63 }
 0x4de   : > { %v1683_v4 = vrot.slane %v1676_v62, 4 }
 0x4e0   : > { %v1686_v8 = vsel %vm1684_vm9, %v1656_v7, %v1683_v4 }
 0x4e1   : > { %1690 = vst [vmem:[%s245_s14 + $0x8] sm:$0xff] %v1686_v8 }
 0x4e2   : > { %1937 = shalt.err (!%p1934_p3)
}
 0x4e3   : > { %1850 = dma.vmem_to_hbm [thread:$0]  (%p2061_p5), %s1706_s15, 256, %s1708_s16, %s1692_s25  }
 0x4e4 PF: > { %p1856_p4 = scmp.ge.s32.totalorder %s1972_s24, 2  ;;  %s1719_s29 = sand.u32 1, %s1960_s21  }
 0x4e5   : > { %s1720_s10 = scalar_lea.sflag [#allocation3], %s1719_s29 }
 0x4e6   : > { %p1853_p7 = pnand %p1856_p4, %p2065_p6 }
 0x4e8   : > { %p1854_p8 = pneg %p1853_p7 }
 0x4ea   : > { %1955 = dma.done.wait (%p1854_p8), %s1720_s10, 256  }
 0x4eb   : > { %1957 = vsyncadd (%p1854_p8), %s1720_s10, 4294967040  ;;  %p16_p9 = scmp.ge.s32.totalorder %s2048_s27, 4   ;;  %s2321_s21 = smov %s1964_s22 }
 0x4ec   : > { %s2322_s22 = smov %s1968_s23  ;;  %s2323_s23 = smov %s2059_s30 }
 0x4ed   : > { %s2324_s24 = smov %s2048_s27  ;;  %18 = sbr.rel (!%p16_p9) target bundleno = 3 (0x3), region = 97 }
 0x4f2   :  { %1726 = vsyncpa [#allocation3], 1 }
 0x4f3   :  { %1728 = vsyncpa [#allocation3 + $0x1], 1 }

</bundles_post_ra>
